<compile_context>
chip_gen: v7x
topology: tpu7x:2x2x1
jax: 0.10.0
libtpu: 0.0.40
codegen_flags: <defaults>
</compile_context>

<pallas_src>
import functools

import jax
import jax.numpy as jnp
from jax.experimental import pallas as pl
from jax.experimental.pallas import tpu as pltpu


def _round_up(x, m):
    return (x + m - 1) // m * m


@functools.lru_cache(maxsize=None)
def _tpu_generation():
    try:
        kind = jax.devices()[0].device_kind.lower()
    except Exception:
        kind = ""
    if "v5 lite" in kind or "v5e" in kind or "v5lite" in kind:
        return "v5e"
    if "v7" in kind or "7x" in kind:
        return "v7x"
    return "v6e"


def _default_tiles():
    """(tm, tn, tk) for the K-tiled matmul path, budgeted per TPU generation."""
    gen = _tpu_generation()
    if gen == "v5e":
        return 512, 512, 1024
    return 512, 1024, 1024            # v6e / v7x


def _vmem_limit():
    gen = _tpu_generation()
    if gen == "v7x":
        return 44 * 1024 * 1024       # 64 MiB physical per TC -> leave headroom
    if gen == "v5e":
        return 64 * 1024 * 1024       # 128 MiB physical
    return 96 * 1024 * 1024           # v6e: 128 MiB physical


def _mosaic_params(dim_sems):
    return pltpu.CompilerParams(dimension_semantics=dim_sems,
                                vmem_limit_bytes=_vmem_limit())


# ----------------------------------------------------------------------------
# Fused matmul kernels:  out = [relu]( A @ B + bias [+ residual] )
#   bf16 operands, f32 accumulation.
# ----------------------------------------------------------------------------
def _mm_bias_kernel(a_ref, b_ref, bias_ref, o_ref, *, relu):
    y = jnp.dot(a_ref[...], b_ref[...],
                preferred_element_type=jnp.float32) + bias_ref[...]
    if relu:
        y = jnp.maximum(y, 0.0)
    o_ref[...] = y.astype(o_ref.dtype)


def _mm_bias_res_kernel(a_ref, b_ref, bias_ref, res_ref, o_ref, *, relu):
    y = (jnp.dot(a_ref[...], b_ref[...], preferred_element_type=jnp.float32)
         + bias_ref[...] + res_ref[...].astype(jnp.float32))
    if relu:
        y = jnp.maximum(y, 0.0)
    o_ref[...] = y.astype(o_ref.dtype)


def _fused_mm_kernel(a_ref, b_ref, bias_ref, o_ref, acc_ref, *, relu):
    @pl.when(pl.program_id(2) == 0)
    def _():
        acc_ref[...] = jnp.zeros_like(acc_ref)

    acc_ref[...] += jnp.dot(a_ref[...], b_ref[...],
                            preferred_element_type=jnp.float32)

    @pl.when(pl.program_id(2) == pl.num_programs(2) - 1)
    def _():
        y = acc_ref[...] + bias_ref[...]
        if relu:
            y = jnp.maximum(y, 0.0)
        o_ref[...] = y.astype(o_ref.dtype)


def _fused_mm_res_kernel(a_ref, b_ref, bias_ref, res_ref, o_ref, acc_ref, *, relu):
    @pl.when(pl.program_id(2) == 0)
    def _():
        acc_ref[...] = jnp.zeros_like(acc_ref)

    acc_ref[...] += jnp.dot(a_ref[...], b_ref[...],
                            preferred_element_type=jnp.float32)

    @pl.when(pl.program_id(2) == pl.num_programs(2) - 1)
    def _():
        y = acc_ref[...] + bias_ref[...] + res_ref[...].astype(jnp.float32)
        if relu:
            y = jnp.maximum(y, 0.0)
        o_ref[...] = y.astype(o_ref.dtype)


_MAX_RESIDENT_K = 2048
_MAX_RESIDENT_B_BYTES = 8 * 1024 * 1024


def fused_matmul(a, b, bias, *, relu, residual=None, out_dtype=jnp.bfloat16):
    """(M,K) @ (K,N) + bias(1,N) [+ residual(M,N)], optional ReLU.

    Small-K (all 1x1 convs, stem): single K block, grid ordered (Cout tiles, M tiles)
    with M innermost so the weight tile stays VMEM-resident across the M sweep.
    Large-K (im2col 3x3 stride-2 convs): 3-axis K-tiled accumulation. tk always
    divides K exactly (pad fallback) so no garbage enters the accumulation.
    """
    M, K = a.shape
    K2, N = b.shape
    assert K == K2 and bias.shape == (1, N)
    tm0, tn0, tk0 = _default_tiles()

    a = a.astype(jnp.bfloat16)
    b = b.astype(jnp.bfloat16)
    bias = bias.astype(jnp.float32)

    cost = pl.CostEstimate(
        flops=2 * M * N * K, transcendentals=0,
        bytes_accessed=2 * (M * K + K * N + M * N
                            + (M * N if residual is not None else 0)) + 4 * N)

    if K <= _MAX_RESIDENT_K and K * N * 2 <= _MAX_RESIDENT_B_BYTES:
        # ----- weight-resident path: single K block, Cout tiles outer, M tiles inner -----
        tm = tm0 if M > tm0 else M
        n_i = pl.cdiv(M, tm)
        tn = N
        if n_i == 1 and N >= 256:
            tn = _round_up(N // 2, 128)      # keep >=2 parallel tiles (v7x megacore)
        n_j = pl.cdiv(N, tn)

        in_specs = [pl.BlockSpec((tm, K), lambda j, i: (i, 0)),
                    pl.BlockSpec((K, tn), lambda j, i: (0, j)),
                    pl.BlockSpec((1, tn), lambda j, i: (0, j))]
        args = [a, b, bias]
        if residual is not None:
            in_specs.append(pl.BlockSpec((tm, tn), lambda j, i: (i, j)))
            args.append(residual)
            kern = functools.partial(_mm_bias_res_kernel, relu=relu)
        else:
            kern = functools.partial(_mm_bias_kernel, relu=relu)

        return pl.pallas_call(
            kern,
            out_shape=jax.ShapeDtypeStruct((M, N), out_dtype),
            grid_spec=pltpu.PrefetchScalarGridSpec(
                num_scalar_prefetch=0,
                grid=(n_j, n_i),
                in_specs=in_specs,
                out_specs=pl.BlockSpec((tm, tn), lambda j, i: (i, j))),
            compiler_params=_mosaic_params(("parallel", "parallel")),
            cost_estimate=cost,
        )(*args)

    # ----- K-tiled path (large-K im2col convs) -----
    if K <= tk0:
        tk = K
    else:
        tk = 0
        for cand in range(tk0, 127, -128):
            if K % cand == 0:
                tk = cand
                break
        if tk == 0:                           # rare fallback: pad K
            tk = tk0
            Kp = _round_up(K, tk)
            a = jnp.pad(a, ((0, 0), (0, Kp - K)))
            b = jnp.pad(b, ((0, Kp - K), (0, 0)))
            K = Kp

    tm = tm0 if M > tm0 else M
    tn = tn0 if N > tn0 else N
    grid = (pl.cdiv(M, tm), pl.cdiv(N, tn), K // tk)

    in_specs = [pl.BlockSpec((tm, tk), lambda i, j, k: (i, k)),
                pl.BlockSpec((tk, tn), lambda i, j, k: (k, j)),
                pl.BlockSpec((1, tn), lambda i, j, k: (0, j))]
    args = [a, b, bias]
    if residual is not None:
        in_specs.append(pl.BlockSpec((tm, tn), lambda i, j, k: (i, j)))
        args.append(residual)
        kern = functools.partial(_fused_mm_res_kernel, relu=relu)
    else:
        kern = functools.partial(_fused_mm_kernel, relu=relu)

    return pl.pallas_call(
        kern,
        out_shape=jax.ShapeDtypeStruct((M, N), out_dtype),
        grid_spec=pltpu.PrefetchScalarGridSpec(
            num_scalar_prefetch=0,
            grid=grid,
            in_specs=in_specs,
            out_specs=pl.BlockSpec((tm, tn), lambda i, j, k: (i, j)),
            scratch_shapes=[pltpu.VMEM((tm, tn), jnp.float32)]),
        compiler_params=_mosaic_params(("parallel", "parallel", "arbitrary")),
        cost_estimate=cost,
    )(*args)


# ----------------------------------------------------------------------------
# Direct stride-1 3x3 conv: 9-tap shifted-slice accumulation, no HBM im2col.
# ----------------------------------------------------------------------------
def _conv3x3_kernel(x_ref, w_ref, b_ref, o_ref, acc_ref, *, wp, relu):
    # x_ref: (1, Rimg, Cin) flattened padded image (+1 zero row front/back)
    # w_ref: (9*Cin, tn)    o_ref: (1, Mw, tn)    acc_ref: (Mw, tn) f32
    mw = o_ref.shape[1]
    cin = x_ref.shape[2]
    acc_ref[...] = jnp.zeros_like(acc_ref)
    for t in range(9):
        off = (t // 3) * wp + (t % 3)
        a = x_ref[0, off:off + mw, :]                       # contiguous row window
        wt = w_ref[t * cin:(t + 1) * cin, :]
        acc_ref[...] += jnp.dot(a, wt, preferred_element_type=jnp.float32)
    y = acc_ref[...] + b_ref[...]
    if relu:
        y = jnp.maximum(y, 0.0)
    o_ref[0, :, :] = y.astype(o_ref.dtype)


def conv3x3_s1_direct(x, w2d, bias, *, relu, out_dtype=jnp.bfloat16):
    """Stride-1 3x3 'same' conv.  Computes a 'wide' output laid out over the padded
    width (Wp = W+2); every tap is then a contiguous row window of the flattened
    padded image, so the whole 9-tap accumulation runs on VMEM-resident data.  The
    Wp-W garbage columns are sliced away afterwards."""
    N, H, W, Cin = x.shape
    Cout = bias.shape[1]
    Hp, Wp = H + 2, W + 2
    mw = H * Wp
    rimg = Hp * Wp + 2

    xp = jnp.pad(x, ((0, 0), (1, 1), (1, 1), (0, 0))).reshape(N, Hp * Wp, Cin)
    xpf = jnp.pad(xp, ((0, 0), (1, 1), (0, 0)))              # (N, rimg, Cin)

    tn = min(Cout, 256)
    grid = (Cout // tn, N)
    cost = pl.CostEstimate(
        flops=2 * N * mw * 9 * Cin * Cout, transcendentals=0,
        bytes_accessed=2 * (N * rimg * Cin + 9 * Cin * Cout + N * mw * Cout))

    wide = pl.pallas_call(
        functools.partial(_conv3x3_kernel, wp=Wp, relu=relu),
        out_shape=jax.ShapeDtypeStruct((N, mw, Cout), out_dtype),
        grid_spec=pltpu.PrefetchScalarGridSpec(
            num_scalar_prefetch=0,
            grid=grid,
            in_specs=[pl.BlockSpec((1, rimg, Cin), lambda j, n: (n, 0, 0)),
                      pl.BlockSpec((9 * Cin, tn), lambda j, n: (0, j)),
                      pl.BlockSpec((1, tn), lambda j, n: (0, j))],
            out_specs=pl.BlockSpec((1, mw, tn), lambda j, n: (n, 0, j)),
            scratch_shapes=[pltpu.VMEM((mw, tn), jnp.float32)]),
        compiler_params=_mosaic_params(("parallel", "parallel")),
        cost_estimate=cost,
    )(xpf.astype(jnp.bfloat16), w2d, bias.astype(jnp.float32))

    return wide.reshape(N, H, Wp, Cout)[:, :, 1:W + 1, :]


# ----------------------------------------------------------------------------
# Convolution dispatcher (BN/ReLU/residual always fused in the matmul epilogue)
# ----------------------------------------------------------------------------
def conv2d_fused(x, w2d, bias, *, kh, kw, stride, padding, relu,
                 residual=None, out_dtype=jnp.bfloat16):
    """x: (N,H,W,Cin) bf16 NHWC; w2d: (kh*kw*Cin[_padded], Cout) bf16, BN scale folded."""
    N, H, W, Cin = x.shape
    Cout = bias.shape[1]
    Ho = (H + 2 * padding - kh) // stride + 1
    Wo = (W + 2 * padding - kw) // stride + 1

    if kh == 1 and kw == 1:
        xs = x if stride == 1 else x[:, ::stride, ::stride, :]
        a = xs.reshape(N * Ho * Wo, Cin).astype(jnp.bfloat16)
        res2 = None if residual is None else residual.reshape(N * Ho * Wo, Cout)
        out = fused_matmul(a, w2d, bias, relu=relu, residual=res2, out_dtype=out_dtype)
        return out.reshape(N, Ho, Wo, Cout)

    if kh == 3 and kw == 3 and stride == 1 and padding == 1 and residual is None:
        return conv3x3_s1_direct(x, w2d, bias, relu=relu, out_dtype=out_dtype)

    # generic: im2col + fused matmul (7x7 stem, stride-2 3x3 convs)
    xp = jnp.pad(x, ((0, 0), (padding, padding), (padding, padding), (0, 0))) \
        if padding > 0 else x
    patches = [xp[:, i:i + stride * Ho:stride, j:j + stride * Wo:stride, :]
               for i in range(kh) for j in range(kw)]
    a = jnp.concatenate(patches, axis=-1).reshape(N * Ho * Wo, kh * kw * Cin)
    k_w = w2d.shape[0]
    if a.shape[1] < k_w:            # K padded offline to a 128 multiple (stem: 147 -> 256)
        a = jnp.pad(a, ((0, 0), (0, k_w - a.shape[1])))
    a = a.astype(jnp.bfloat16)
    res2 = None if residual is None else residual.reshape(N * Ho * Wo, Cout)
    out = fused_matmul(a, w2d, bias, relu=relu, residual=res2, out_dtype=out_dtype)
    return out.reshape(N, Ho, Wo, Cout)


# ----------------------------------------------------------------------------
# Maxpool 3x3 / stride 2 / pad 1 : one kernel over a pair-reshaped padded input
# (128-lane dense), no HBM slab materialization.
# ----------------------------------------------------------------------------
def _maxpool_kernel(x_ref, o_ref):
    # x_ref: (1, Ho+1, 2, Wo+1, 2*C) pair-reshaped padded input; o_ref: (1, Ho, Wo, C)
    _, ho, wo, c = o_ref.shape
    x = x_ref[...]
    r = jnp.maximum(jnp.maximum(x[:, :ho, 0], x[:, :ho, 1]), x[:, 1:ho + 1, 0])
    o_ref[...] = jnp.maximum(jnp.maximum(r[..., :wo, :c], r[..., :wo, c:]),
                             r[..., 1:wo + 1, :c])


def maxpool_3x3_s2_p1(x):
    N, H, W, C = x.shape
    assert H % 2 == 0 and W % 2 == 0, "maxpool pair-trick needs even spatial dims"
    Ho, Wo = H // 2, W // 2
    xp = jnp.pad(x, ((0, 0), (1, 1), (1, 1), (0, 0)), constant_values=-jnp.inf)
    xr = xp.reshape(N, Ho + 1, 2, Wo + 1, 2 * C)            # free, contiguous reshape
    return pl.pallas_call(
        _maxpool_kernel,
        out_shape=jax.ShapeDtypeStruct((N, Ho, Wo, C), x.dtype),
        grid_spec=pltpu.PrefetchScalarGridSpec(
            num_scalar_prefetch=0, grid=(N,),
            in_specs=[pl.BlockSpec((1, Ho + 1, 2, Wo + 1, 2 * C),
                                   lambda n: (n, 0, 0, 0, 0))],
            out_specs=pl.BlockSpec((1, Ho, Wo, C), lambda n: (n, 0, 0, 0))),
        compiler_params=pltpu.CompilerParams(dimension_semantics=("parallel",)),
    )(xr)


# ----------------------------------------------------------------------------
# Fused tail: global average pool + fc (+bias) + log_softmax in one kernel.
# Pad fc lanes carry bias=-1e30; safe because logits stay f32 (exp -> exactly 0).
# ----------------------------------------------------------------------------
def _tail_kernel(x_ref, w_ref, b_ref, o_ref):
    feat = jnp.mean(x_ref[...].astype(jnp.float32), axis=1)              # (N, 2048)
    logits = jnp.dot(feat.astype(jnp.bfloat16), w_ref[...],
                     preferred_element_type=jnp.float32) + b_ref[...]
    m = jnp.max(logits, axis=-1, keepdims=True)
    s = logits - m
    lse = jnp.log(jnp.sum(jnp.exp(s), axis=-1, keepdims=True))
    o_ref[...] = s - lse


def tail_pool_fc_logsoftmax(x, fc_w, fc_b, fc_size):
    N, Hf, Wf, C = x.shape
    xs = x.reshape(N, Hf * Wf, C)
    npad = fc_w.shape[1]
    logp = pl.pallas_call(
        _tail_kernel,
        out_shape=jax.ShapeDtypeStruct((N, npad), jnp.float32),
    )(xs, fc_w, fc_b)
    return logp[:, :fc_size]


# ----------------------------------------------------------------------------
# Parameters (deterministic synthetic init, wide_resnet50_2 shapes)
#   BN (eval-mode) scale folded into conv weights; weights stored bf16 as (K, Cout).
# ----------------------------------------------------------------------------
_BN_EPS = 1e-5


def _he_conv(key, cout, cin, kh, kw):
    fan_in = cin * kh * kw
    return jax.random.normal(key, (cout, cin, kh, kw), jnp.float32) * \
        jnp.sqrt(2.0 / fan_in)


def _bn_fold(c):
    gamma, beta = jnp.ones((c,), jnp.float32), jnp.zeros((c,), jnp.float32)
    mean, var = jnp.zeros((c,), jnp.float32), jnp.ones((c,), jnp.float32)
    scale = gamma * jax.lax.rsqrt(var + _BN_EPS)
    bias = beta - mean * scale
    return scale, bias


def _fold_conv_bn(w, pad_k_to=None):
    """(Cout,Cin,kh,kw) f32 -> ((kh*kw*Cin[_pad], Cout) bf16 BN-folded, (1,Cout) f32 bias)."""
    cout = w.shape[0]
    scale, bias = _bn_fold(cout)
    w = w * scale.reshape(-1, 1, 1, 1)
    w2d = jnp.transpose(w, (2, 3, 1, 0)).reshape(-1, cout)
    if pad_k_to is not None and w2d.shape[0] < pad_k_to:
        w2d = jnp.pad(w2d, ((0, pad_k_to - w2d.shape[0]), (0, 0)))
    return w2d.astype(jnp.bfloat16), bias.reshape(1, cout).astype(jnp.float32)


def _make_block(key, inplanes, planes, width, stride):
    ks = jax.random.split(key, 4)
    expansion = 4
    p = {"stride": stride}
    p["w1"], p["b1"] = _fold_conv_bn(_he_conv(ks[0], width, inplanes, 1, 1))
    p["w2"], p["b2"] = _fold_conv_bn(_he_conv(ks[1], width, width, 3, 3))
    p["w3"], p["b3"] = _fold_conv_bn(_he_conv(ks[2], planes * expansion, width, 1, 1))
    if stride != 1 or inplanes != planes * expansion:
        p["wd"], p["bd"] = _fold_conv_bn(_he_conv(ks[3], planes * expansion, inplanes, 1, 1))
    return p


def build_params(key, fc_size):
    params = {"fc_size": fc_size}
    key, k = jax.random.split(key)
    # stem K = 7*7*3 = 147 padded offline to 256 so lanes/sublanes are 128-aligned
    params["w_stem"], params["b_stem"] = _fold_conv_bn(_he_conv(k, 64, 3, 7, 7),
                                                       pad_k_to=256)

    inplanes = 64
    cfg = [("layer1", 64, 3, 1), ("layer2", 128, 4, 2),
           ("layer3", 256, 6, 2), ("layer4", 512, 3, 2)]
    for name, planes, nblocks, stride in cfg:
        width = planes * 2                    # wide_resnet50_2: width_per_group=128
        blocks = []
        for b in range(nblocks):
            key, k = jax.random.split(key)
            s = stride if b == 0 else 1
            blocks.append(_make_block(k, inplanes, planes, width, s))
            inplanes = planes * 4
        params[name] = blocks

    key, k1, k2 = jax.random.split(key, 3)
    fc_w = jax.random.normal(k1, (fc_size, 2048), jnp.float32) / jnp.sqrt(2048.0)
    fc_b = jax.random.normal(k2, (fc_size,), jnp.float32) * 0.01
    n_pad = max(128, _round_up(fc_size, 128))   # lane-dense logits; pad cols masked via bias
    w_pad = jnp.zeros((2048, n_pad), jnp.float32).at[:, :fc_size].set(fc_w.T)
    b_pad = jnp.full((1, n_pad), -1e30, jnp.float32).at[0, :fc_size].set(fc_b)
    params["fc_w"] = w_pad.astype(jnp.bfloat16)
    params["fc_b"] = b_pad
    return params


# ----------------------------------------------------------------------------
# Forward pass
# ----------------------------------------------------------------------------
def bottleneck(x, p):
    s = p["stride"]
    out = conv2d_fused(x, p["w1"], p["b1"], kh=1, kw=1, stride=1, padding=0, relu=True)
    out = conv2d_fused(out, p["w2"], p["b2"], kh=3, kw=3, stride=s, padding=1, relu=True)
    if "wd" in p:
        identity = conv2d_fused(x, p["wd"], p["bd"], kh=1, kw=1, stride=s, padding=0,
                                relu=False)
    else:
        identity = x
    # conv3 + BN bias + residual add + ReLU all fused in one matmul epilogue.
    return conv2d_fused(out, p["w3"], p["b3"], kh=1, kw=1, stride=1, padding=0,
                        relu=True, residual=identity)


def wide_resnet50_forward(params, x_nchw):
    """x_nchw: (N, 3, H, W) float32 (PyTorch layout). Returns log-probs (N, fc_size)."""
    x = jnp.transpose(x_nchw, (0, 2, 3, 1)).astype(jnp.bfloat16)          # -> NHWC bf16
    x = conv2d_fused(x, params["w_stem"], params["b_stem"],
                     kh=7, kw=7, stride=2, padding=3, relu=True)
    x = maxpool_3x3_s2_p1(x)
    for name in ("layer1", "layer2", "layer3", "layer4"):
        for block_p in params[name]:
            x = bottleneck(x, block_p)
    return tail_pool_fc_logsoftmax(x, params["fc_w"], params["fc_b"], params["fc_size"])


# ----------------------------------------------------------------------------
if __name__ == "__main__":
    fc_size = 16
    key = jax.random.PRNGKey(0)
    k_params, k_x = jax.random.split(key)

    params = build_params(k_params, fc_size)
    x = jax.random.normal(k_x, (2, 3, 32, 32), jnp.float32)       # NCHW, like PyTorch

    out = wide_resnet50_forward(params, x)
    out = jax.block_until_ready(out)

    assert out.shape == (2, fc_size) and out.dtype == jnp.float32
    # log_softmax rows must (approximately) exponentiate-sum to 1
    assert jnp.allclose(jnp.sum(jnp.exp(out), axis=-1), 1.0, atol=1e-3)
    print("KERNEL_OK")
</pallas_src>

<mosaic_0001>
module attributes {stable_mosaic.version = 11 : i64} {
  func.func @_mm_bias_kernel(%arg0: i32, %arg1: i32, %arg2: memref<512x256xbf16, #tpu.memory_space<vmem>>, %arg3: memref<256x64xbf16, #tpu.memory_space<vmem>>, %arg4: memref<1x64xf32, #tpu.memory_space<vmem>>, %arg5: memref<512x64xbf16, #tpu.memory_space<vmem>>) attributes {dimension_semantics = [#tpu.dimension_semantics<parallel>, #tpu.dimension_semantics<parallel>], iteration_bounds = array<i64: 1, 1>, scalar_prefetch = 0 : i64, scratch_operands = 0 : i64, tpu.core_type = #tpu.core_type<tc>, window_params = [{transform_indices = @transform_0, window_bounds = array<i64: 512, 256>}, {transform_indices = @transform_1, window_bounds = array<i64: 256, 64>}, {transform_indices = @transform_2, window_bounds = array<i64: 1, 64>}, {transform_indices = @transform_3, window_bounds = array<i64: 512, 64>}]} {
    %c0 = arith.constant 0 : index
    %c0_0 = arith.constant 0 : index
    %0 = vector.load %arg2[%c0, %c0_0] : memref<512x256xbf16, #tpu.memory_space<vmem>>, vector<512x256xbf16>
    %c0_1 = arith.constant 0 : index
    %c0_2 = arith.constant 0 : index
    %1 = vector.load %arg3[%c0_1, %c0_2] : memref<256x64xbf16, #tpu.memory_space<vmem>>, vector<256x64xbf16>
    %cst = arith.constant dense<0.000000e+00> : vector<512x64xf32>
    %2 = tpu.matmul %0, %1, %cst {dimension_numbers = #tpu.dot_dimension_numbers<[1], [0], [0], [1], [0, 0, 1, 1], [], []>} : vector<512x256xbf16>, vector<256x64xbf16>, vector<512x64xf32> -> vector<512x64xf32>
    %c0_3 = arith.constant 0 : index
    %c0_4 = arith.constant 0 : index
    %3 = vector.load %arg4[%c0_3, %c0_4] : memref<1x64xf32, #tpu.memory_space<vmem>>, vector<1x64xf32>
    %4 = vector.broadcast %3 : vector<1x64xf32> to vector<512x64xf32>
    %5 = arith.addf %2, %4 : vector<512x64xf32>
    %cst_5 = arith.constant 0.000000e+00 : f32
    %6 = vector.broadcast %cst_5 : f32 to vector<512x64xf32>
    %7 = arith.maximumf %5, %6 : vector<512x64xf32>
    %8 = arith.truncf %7 : vector<512x64xf32> to vector<512x64xbf16>
    %c0_6 = arith.constant 0 : index
    %c0_7 = arith.constant 0 : index
    %9 = vector.load %arg5[%c0_6, %c0_7] : memref<512x64xbf16, #tpu.memory_space<vmem>>, vector<512x64xbf16>
    tpu.vector_store %arg5[%c0_6, %c0_7], %8 {strides = array<i32>} : memref<512x64xbf16, #tpu.memory_space<vmem>>, vector<512x64xbf16>,
    return
  }
  func.func @transform_0(%arg0: i32, %arg1: i32) -> (i32, i32) {
    %c0_i32 = arith.constant 0 : i32
    %c0_i32_0 = arith.constant 0 : i32
    return %arg1, %c0_i32 : i32, i32
  }
  func.func @transform_1(%arg0: i32, %arg1: i32) -> (i32, i32) {
    %c0_i32 = arith.constant 0 : i32
    %c0_i32_0 = arith.constant 0 : i32
    return %c0_i32, %arg0 : i32, i32
  }
  func.func @transform_2(%arg0: i32, %arg1: i32) -> (i32, i32) {
    %c0_i32 = arith.constant 0 : i32
    %c0_i32_0 = arith.constant 0 : i32
    return %c0_i32, %arg0 : i32, i32
  }
  func.func @transform_3(%arg0: i32, %arg1: i32) -> (i32, i32) {
    %c0_i32 = arith.constant 0 : i32
    return %arg1, %arg0 : i32, i32
  }
}

</mosaic_0001>

<bundles_post_ra>
// kernel: tpu_custom_call.1
= control target key start
LH: loop header
LB: loop body
LE: loop exit
PB: predicated region body
PF: predicated region fallthrough
CT: control target
= control target key end

     0   :  { %8 = vsyncpa [#allocation3], 0  ;;  %s1967_s0 = inlined_call_operand.hbm [shape: bf16[512,256], index: 0, kind: input, shape index: {}]   ;;  %s1968_s1 = inlined_call_operand.hbm [shape: bf16[256,64], index: 1, kind: input, shape index: {}]   ;;  %s1969_s2 = inlined_call_operand.hbm [shape: f32[1,64], index: 2, kind: input, shape index: {}]   ;;  %s1970_s3 = inlined_call_operand.hbm [shape: bf16[512,64], index: 3, kind: output, shape index: {}]  }
   0x1   :  { %9 = vsyncpa [#allocation6], 0 }
   0x2   :  { %10 = vsyncpa [#allocation4], 0  ;;  %s1722_s12 = smov [#allocation5]   ;;  %s1628_s16 = scalar_lea.hbm %s1968_s1, 2048 }
   0x3   :  { %s28_s13 = sshll.u32 %s1722_s12, 4  ;;  %p1629_p0 = scmp.ne.s32.totalorder %s1968_s1, %s1628_s16  ;;  %s29_s13 = int_to_ptr.vmem [resolvable:$true] %s28_s13 }
   0x4   :  { %p1632_p1 = scmp.lt.u32.totalorder %s1628_s16, %s1968_s1 }
   0x6   :  { %p1634_p2 = pnand %p1632_p1, %p1629_p0 }
   0x8   :  { %1637 = shalt.err (!%p1634_p2)
}
   0x9   :  { %s1638_s21 = scalar_lea.vmem %s29_s13, 2048  ;;  %p1643_p4 = scmp.lt.s32.totalorder %s29_s13, %s29_s13 }
   0xa   :  { %p1639_p3 = scmp.ne.s32.totalorder %s29_s13, %s1638_s21  ;;  %p1644_p5 = scmp.lt.s32.totalorder %s1638_s21, %s1638_s21 }
   0xc   :  { %p1645_p6 = por %p1644_p5, %p1643_p4 }
   0xe   :  { %p1646_p7 = pnand %p1645_p6, %p1639_p3 }
  0x10   :  { %1649 = shalt.err (!%p1646_p7)
}
  0x11   :  { %s1723_s22 = smov 64   ;;  %s1724_s23 = smov 4  }
  0x12   :  { %34 = dma.hbm_to_vmem [thread:$0]  %s1968_s1, 2048, %s29_s13, [#allocation6], %s1723_s22, %s1723_s22, %s1724_s23  }
  0x13   :  { %s1725_s26 = smov [#allocation2]   ;;  %s1650_s30 = scalar_lea.hbm %s1967_s0, 8192 }
  0x14   :  { %s16_s27 = sshll.u32 %s1725_s26, 4  ;;  %p1651_p8 = scmp.ne.s32.totalorder %s1967_s0, %s1650_s30  ;;  %s17_s27 = int_to_ptr.vmem [resolvable:$true] %s16_s27 }
  0x15   :  { %p1654_p9 = scmp.lt.u32.totalorder %s1650_s30, %s1967_s0 }
  0x17   :  { %p1656_p10 = pnand %p1654_p9, %p1651_p8 }
  0x19   :  { %1659 = shalt.err (!%p1656_p10)
}
  0x1a   :  { %s1660_s8 = scalar_lea.vmem %s17_s27, 8192  ;;  %p1665_p12 = scmp.lt.s32.totalorder %s17_s27, %s17_s27 }
  0x1b   :  { %p1661_p11 = scmp.ne.s32.totalorder %s17_s27, %s1660_s8  ;;  %p1666_p13 = scmp.lt.s32.totalorder %s1660_s8, %s1660_s8 }
  0x1d   :  { %p1667_p0 = por %p1666_p13, %p1665_p12 }
  0x1f   :  { %p1668_p1 = pnand %p1667_p0, %p1661_p11 }
  0x21   :  { %1671 = shalt.err (!%p1668_p1)
}
  0x22   :  { %s1726_s1 = smov 128   ;;  %s1727_s9 = smov 8  }
  0x23   :  { %22 = dma.hbm_to_vmem [thread:$0]  %s1967_s0, 8192, %s17_s27, [#allocation3], %s1726_s1, %s1726_s1, %s1727_s9  }
  0x24   :  { %s1728_s12 = smov [#allocation7]   ;;  %s1672_s16 = scalar_lea.hbm %s1969_s2, 16 }
  0x25   :  { %s41_s13 = sshll.u32 %s1728_s12, 4  ;;  %p1673_p2 = scmp.ne.s32.totalorder %s1969_s2, %s1672_s16  ;;  %s42_s13 = int_to_ptr.vmem [resolvable:$true] %s41_s13 }
  0x26   :  { %p1676_p3 = scmp.lt.u32.totalorder %s1672_s16, %s1969_s2 }
  0x28   :  { %p1678_p4 = pnand %p1676_p3, %p1673_p2 }
  0x2a   :  { %1681 = shalt.err (!%p1678_p4)
}
  0x2b   :  { %s1682_s21 = scalar_lea.vmem %s42_s13, 16  ;;  %s1686_s0 = scalar_lea.vmem %s42_s13, 32 }
  0x2c   :  { %p1683_p5 = scmp.ne.s32.totalorder %s42_s13, %s1682_s21  ;;  %p1687_p6 = scmp.lt.s32.totalorder %s42_s13, %s42_s13 }
  0x2d   :  { %p1688_p7 = scmp.lt.s32.totalorder %s1686_s0, %s1682_s21 }
  0x2f   :  { %p1689_p8 = por %p1688_p7, %p1687_p6 }
  0x31   :  { %p1690_p9 = pnand %p1689_p8, %p1683_p5 }
  0x33   :  { %1693 = shalt.err (!%p1690_p9)
}
  0x34   :  { %44 = dma.hbm_to_vmem [thread:$0]  %s1969_s2, 16, %s42_s13, [#allocation6]  }
  0x35   :  { %1716 = dma.done.wait [#allocation3], 8192  }
  0x36   :  { %1717 = vsyncadd [#allocation3], 4294959104 }
  0x37   :  { %1718 = dma.done.wait [#allocation6], 2064  }
  0x38   :  { %1719 = vsyncadd [#allocation6], 4294965232  ;;  %v1729_v0 = vmov 0   ;;  %v1516_v1 = vld [vmem:[#allocation5] sm:$0xff]   ;;  %v1517_v2 = vld [vmem:[#allocation5 + $0x8] sm:$0xff]   ;;  %vm1183_vm0 = vcmask 519168  }
  0x39   :  { %574 = vmatprep.subr.bf16.mxu0 %v1729_v0  ;;  %1475 = vmatprep.subr.bf16.mxu1 %v1729_v0  ;;  %v1518_v3 = vld [vmem:[#allocation5 + $0x10] sm:$0xff]   ;;  %v1519_v4 = vld [vmem:[#allocation5 + $0x18] sm:$0xff]   ;;  %v1520_v5 = vld [vmem:[#allocation5 + $0x20] sm:$0xff]   ;;  %s1730_s2 = smov [#allocation8]  }
  0x3a   :  { %575 = vmatpush1.bf16.msra.mxu0 %v1516_v1  ;;  %1491 = vmatpush1.bf16.msra.mxu1 %v1516_v1  ;;  %v1534_v6 = vld [vmem:[#allocation2 + $0x4] ss:$8 sps:$4 sm:$0xff]   ;;  %v1522_v9 = vld [vmem:[#allocation5 + $0x30] sm:$0xff]   ;;  %v1523_v10 = vld [vmem:[#allocation5 + $0x38] sm:$0xff]   ;;  %s1253_s26 = sshll.u32 %s1730_s2, 4  ;;  %s1254_s26 = int_to_ptr.vmem [resolvable:$true] %s1253_s26 }
  0x3b   :  { %576 = vmatprep.subr.bf16.mxu0 %v1729_v0  ;;  %1476 = vmatprep.subr.bf16.mxu1 %v1729_v0  ;;  %v1521_v7 = vld [vmem:[#allocation5 + $0x28] sm:$0xff]   ;;  %v1524_v11 = vld [vmem:[#allocation5 + $0x40] sm:$0xff]   ;;  %v1526_v13 = vld [vmem:[#allocation5 + $0x50] sm:$0xff]   ;;  %s1694_s27 = scalar_lea.vmem %s1254_s26, 4096  ;;  %p1699_p11 = scmp.lt.s32.totalorder %s1254_s26, %s1254_s26 }
  0x3c   :  { %v1537_v8 = vld [vmem:[#allocation2 + $0x104] ss:$8 sps:$4 sm:$0xff]   ;;  %606 = vmatprep.mubr.bf16.mxu0 %v1534_v6  ;;  %v1527_v14 = vld [vmem:[#allocation5 + $0x58] sm:$0xff]   ;;  %v1530_v17 = vld [vmem:[#allocation5 + $0x70] sm:$0xff]   ;;  %p1695_p10 = scmp.ne.s32.totalorder %s1254_s26, %s1694_s27  ;;  %p1700_p12 = scmp.lt.s32.totalorder %s1694_s27, %s1694_s27 }
  0x3d   :  { %734 = vmatprep.mubr.bf16.mxu1 %v1537_v8  ;;  %v1525_v12 = vld [vmem:[#allocation5 + $0x48] sm:$0xff]   ;;  %v1528_v15 = vld [vmem:[#allocation5 + $0x60] sm:$0xff]   ;;  %v1531_v18 = vld [vmem:[#allocation5 + $0x78] sm:$0xff]  }
  0x3e   :  { %577 = vmatpush1.bf16.msra.mxu0 %v1517_v2  ;;  %1492 = vmatpush1.bf16.msra.mxu1 %v1517_v2  ;;  %v1529_v16 = vld [vmem:[#allocation5 + $0x68] sm:$0xff]   ;;  %v1538_v21 = vld [vmem:[#allocation2 + $0x14] ss:$8 sps:$4 sm:$0xff]   ;;  %v1542_v23 = vld [vmem:[#allocation2 + $0x10] ss:$8 sps:$4 sm:$0xff]   ;;  %p1701_p13 = por %p1700_p12, %p1699_p11 }
  0x3f   :  { %578 = vmatprep.subr.bf16.mxu0 %v1729_v0  ;;  %1477 = vmatprep.subr.bf16.mxu1 %v1729_v0  ;;  %v1532_v19 = vld [vmem:[#allocation2] ss:$8 sps:$4 sm:$0xff]   ;;  %v1540_v22 = vld [vmem:[#allocation2 + $0x114] ss:$8 sps:$4 sm:$0xff]   ;;  %v1543_v24 = vld [vmem:[#allocation2 + $0x110] ss:$8 sps:$4 sm:$0xff]  }
  0x40   :  { %v1535_v20 = vld [vmem:[#allocation2 + $0x100] ss:$8 sps:$4 sm:$0xff]   ;;  %v1544_v25 = vld [vmem:[#allocation2 + $0x24] ss:$8 sps:$4 sm:$0xff]   ;;  %v1550_v29 = vld [vmem:[#allocation2 + $0x34] ss:$8 sps:$4 sm:$0xff]   ;;  %p1702_p0 = pnand %p1701_p13, %p1695_p10 }
  0x41   :  { %v1546_v26 = vld [vmem:[#allocation2 + $0x124] ss:$8 sps:$4 sm:$0xff]   ;;  %v1548_v27 = vld [vmem:[#allocation2 + $0x20] ss:$8 sps:$4 sm:$0xff]   ;;  %v1552_v30 = vld [vmem:[#allocation2 + $0x134] ss:$8 sps:$4 sm:$0xff]  }
  0x42   :  { %579 = vmatpush1.bf16.msra.mxu0 %v1518_v3  ;;  %1493 = vmatpush1.bf16.msra.mxu1 %v1518_v3  ;;  %v1549_v28 = vld [vmem:[#allocation2 + $0x120] ss:$8 sps:$4 sm:$0xff]   ;;  %v1554_v31 = vld [vmem:[#allocation2 + $0x30] ss:$8 sps:$4 sm:$0xff]   ;;  %v1556_v33 = vld [vmem:[#allocation2 + $0x44] ss:$8 sps:$4 sm:$0xff]  }
  0x43   :  { %580 = vmatprep.subr.bf16.mxu0 %v1729_v0  ;;  %1478 = vmatprep.subr.bf16.mxu1 %v1729_v0  ;;  %v1555_v32 = vld [vmem:[#allocation2 + $0x130] ss:$8 sps:$4 sm:$0xff]   ;;  %v1558_v34 = vld [vmem:[#allocation2 + $0x144] ss:$8 sps:$4 sm:$0xff]   ;;  %v1560_v35 = vld [vmem:[#allocation2 + $0x40] ss:$8 sps:$4 sm:$0xff]  }
  0x44   :  { %v1561_v36 = vld [vmem:[#allocation2 + $0x140] ss:$8 sps:$4 sm:$0xff]   ;;  %v1562_v37 = vld [vmem:[#allocation2 + $0x54] ss:$8 sps:$4 sm:$0xff]   ;;  %v1566_v39 = vld [vmem:[#allocation2 + $0x50] ss:$8 sps:$4 sm:$0xff]  }
  0x45   :  { %v1564_v38 = vld [vmem:[#allocation2 + $0x154] ss:$8 sps:$4 sm:$0xff]   ;;  %v1567_v40 = vld [vmem:[#allocation2 + $0x150] ss:$8 sps:$4 sm:$0xff]   ;;  %v1568_v41 = vld [vmem:[#allocation2 + $0x64] ss:$8 sps:$4 sm:$0xff]  }
  0x46   :  { %581 = vmatpush1.bf16.msra.mxu0 %v1519_v4  ;;  %1494 = vmatpush1.bf16.msra.mxu1 %v1519_v4  ;;  %v1570_v42 = vld [vmem:[#allocation2 + $0x164] ss:$8 sps:$4 sm:$0xff]   ;;  %v1572_v43 = vld [vmem:[#allocation2 + $0x60] ss:$8 sps:$4 sm:$0xff]   ;;  %v1574_v45 = vld [vmem:[#allocation2 + $0x74] ss:$8 sps:$4 sm:$0xff]  }
  0x47   :  { %582 = vmatprep.subr.bf16.mxu0 %v1729_v0  ;;  %1479 = vmatprep.subr.bf16.mxu1 %v1729_v0  ;;  %v1573_v44 = vld [vmem:[#allocation2 + $0x160] ss:$8 sps:$4 sm:$0xff]   ;;  %v1576_v46 = vld [vmem:[#allocation2 + $0x174] ss:$8 sps:$4 sm:$0xff]   ;;  %v1578_v47 = vld [vmem:[#allocation2 + $0x70] ss:$8 sps:$4 sm:$0xff]  }
  0x48   :  { %v1579_v48 = vld [vmem:[#allocation2 + $0x170] ss:$8 sps:$4 sm:$0xff]   ;;  %v1580_v49 = vld [vmem:[#allocation2 + $0x84] ss:$8 sps:$4 sm:$0xff]   ;;  %v1584_v51 = vld [vmem:[#allocation2 + $0x80] ss:$8 sps:$4 sm:$0xff]  }
  0x49   :  { %v1582_v50 = vld [vmem:[#allocation2 + $0x184] ss:$8 sps:$4 sm:$0xff]   ;;  %v1585_v52 = vld [vmem:[#allocation2 + $0x180] ss:$8 sps:$4 sm:$0xff]   ;;  %v1586_v53 = vld [vmem:[#allocation2 + $0x94] ss:$8 sps:$4 sm:$0xff]  }
  0x4a   :  { %583 = vmatpush1.bf16.msra.mxu0 %v1520_v5  ;;  %1495 = vmatpush1.bf16.msra.mxu1 %v1520_v5  ;;  %v1588_v54 = vld [vmem:[#allocation2 + $0x194] ss:$8 sps:$4 sm:$0xff]   ;;  %v1590_v55 = vld [vmem:[#allocation2 + $0x90] ss:$8 sps:$4 sm:$0xff]   ;;  %v1592_v57 = vld [vmem:[#allocation2 + $0xa4] ss:$8 sps:$4 sm:$0xff]  }
  0x4b   :  { %584 = vmatprep.subr.bf16.mxu0 %v1729_v0  ;;  %1480 = vmatprep.subr.bf16.mxu1 %v1729_v0  ;;  %v1591_v56 = vld [vmem:[#allocation2 + $0x190] ss:$8 sps:$4 sm:$0xff]   ;;  %v1594_v58 = vld [vmem:[#allocation2 + $0x1a4] ss:$8 sps:$4 sm:$0xff]   ;;  %v1596_v59 = vld [vmem:[#allocation2 + $0xa0] ss:$8 sps:$4 sm:$0xff]  }
  0x4c   :  { %v1597_v60 = vld [vmem:[#allocation2 + $0x1a0] ss:$8 sps:$4 sm:$0xff]   ;;  %v1598_v61 = vld [vmem:[#allocation2 + $0xb4] ss:$8 sps:$4 sm:$0xff]   ;;  %v1602_v63 = vld [vmem:[#allocation2 + $0xb0] ss:$8 sps:$4 sm:$0xff]  }
  0x4d   :  { %v1600_v62 = vld [vmem:[#allocation2 + $0x1b4] ss:$8 sps:$4 sm:$0xff]   ;;  %v1604_v1 = vld [vmem:[#allocation2 + $0xc4] ss:$8 sps:$4 sm:$0xff]   ;;  %v1608_v3 = vld [vmem:[#allocation2 + $0xc0] ss:$8 sps:$4 sm:$0xff]  }
  0x4e   :  { %585 = vmatpush1.bf16.msra.mxu0 %v1521_v7  ;;  %1496 = vmatpush1.bf16.msra.mxu1 %v1521_v7  ;;  %v1606_v2 = vld [vmem:[#allocation2 + $0x1c4] ss:$8 sps:$4 sm:$0xff]   ;;  %v1609_v4 = vld [vmem:[#allocation2 + $0x1c0] ss:$8 sps:$4 sm:$0xff]   ;;  %v1610_v5 = vld [vmem:[#allocation2 + $0xd4] ss:$8 sps:$4 sm:$0xff]  }
  0x4f   :  { %586 = vmatprep.subr.bf16.mxu0 %v1729_v0  ;;  %1481 = vmatprep.subr.bf16.mxu1 %v1729_v0  ;;  %v1612_v6 = vld [vmem:[#allocation2 + $0x1d4] ss:$8 sps:$4 sm:$0xff]   ;;  %v1614_v7 = vld [vmem:[#allocation2 + $0xd0] ss:$8 sps:$4 sm:$0xff]  }
  0x50   :  { %v1615_v8 = vld [vmem:[#allocation2 + $0x1d0] ss:$8 sps:$4 sm:$0xff]  }
  0x52   :  { %587 = vmatpush1.bf16.msra.mxu0 %v1522_v9  ;;  %1497 = vmatpush1.bf16.msra.mxu1 %v1522_v9  ;;  %v1616_v9 = vld [vmem:[#allocation2 + $0xe4] ss:$8 sps:$4 sm:$0xff]  }
  0x53   :  { %588 = vmatprep.subr.bf16.mxu0 %v1729_v0  ;;  %1482 = vmatprep.subr.bf16.mxu1 %v1729_v0 }
  0x56   :  { %589 = vmatpush1.bf16.msra.mxu0 %v1523_v10  ;;  %1498 = vmatpush1.bf16.msra.mxu1 %v1523_v10  ;;  %v1618_v10 = vld [vmem:[#allocation2 + $0x1e4] ss:$8 sps:$4 sm:$0xff]  }
  0x57   :  { %590 = vmatprep.subr.bf16.mxu0 %v1729_v0  ;;  %1483 = vmatprep.subr.bf16.mxu1 %v1729_v0 }
  0x5a   :  { %591 = vmatpush1.bf16.msra.mxu0 %v1524_v11  ;;  %1499 = vmatpush1.bf16.msra.mxu1 %v1524_v11  ;;  %v1620_v11 = vld [vmem:[#allocation2 + $0xe0] ss:$8 sps:$4 sm:$0xff]  }
  0x5b   :  { %592 = vmatprep.subr.bf16.mxu0 %v1729_v0  ;;  %1484 = vmatprep.subr.bf16.mxu1 %v1729_v0 }
  0x5e   :  { %593 = vmatpush1.bf16.msra.mxu0 %v1525_v12  ;;  %1500 = vmatpush1.bf16.msra.mxu1 %v1525_v12  ;;  %v1621_v12 = vld [vmem:[#allocation2 + $0x1e0] ss:$8 sps:$4 sm:$0xff]  }
  0x5f   :  { %594 = vmatprep.subr.bf16.mxu0 %v1729_v0  ;;  %1485 = vmatprep.subr.bf16.mxu1 %v1729_v0 }
  0x62   :  { %595 = vmatpush1.bf16.msra.mxu0 %v1526_v13  ;;  %1501 = vmatpush1.bf16.msra.mxu1 %v1526_v13  ;;  %v1622_v13 = vld [vmem:[#allocation2 + $0xf4] ss:$8 sps:$4 sm:$0xff]  }
  0x63   :  { %596 = vmatprep.subr.bf16.mxu0 %v1729_v0  ;;  %1486 = vmatprep.subr.bf16.mxu1 %v1729_v0 }
  0x66   :  { %597 = vmatpush1.bf16.msra.mxu0 %v1527_v14  ;;  %1502 = vmatpush1.bf16.msra.mxu1 %v1527_v14  ;;  %v1624_v14 = vld [vmem:[#allocation2 + $0x1f4] ss:$8 sps:$4 sm:$0xff]  }
  0x67   :  { %598 = vmatprep.subr.bf16.mxu0 %v1729_v0  ;;  %1487 = vmatprep.subr.bf16.mxu1 %v1729_v0 }
  0x6a   :  { %599 = vmatpush1.bf16.msra.mxu0 %v1528_v15  ;;  %1503 = vmatpush1.bf16.msra.mxu1 %v1528_v15  ;;  %v1626_v15 = vld [vmem:[#allocation2 + $0xf0] ss:$8 sps:$4 sm:$0xff]  }
  0x6b   :  { %600 = vmatprep.subr.bf16.mxu0 %v1729_v0  ;;  %1488 = vmatprep.subr.bf16.mxu1 %v1729_v0 }
  0x6e   :  { %601 = vmatpush1.bf16.msra.mxu0 %v1529_v16  ;;  %1504 = vmatpush1.bf16.msra.mxu1 %v1529_v16  ;;  %v1627_v16 = vld [vmem:[#allocation2 + $0x1f0] ss:$8 sps:$4 sm:$0xff]  }
  0x6f   :  { %602 = vmatprep.subr.bf16.mxu0 %v1729_v0  ;;  %1489 = vmatprep.subr.bf16.mxu1 %v1729_v0 }
  0x72   :  { %603 = vmatpush1.bf16.msra.mxu0 %v1530_v17  ;;  %1505 = vmatpush1.bf16.msra.mxu1 %v1530_v17  ;;  %v1822_v17 = vld [vmem:[#allocation7] ss:$0 sm:$0xff] }
  0x73   :  { %604 = vmatprep.subr.bf16.mxu0 %v1729_v0  ;;  %1490 = vmatprep.subr.bf16.mxu1 %v1729_v0  ;;  %v1603_v0 = vld [vmem:[#allocation2 + $0x1b0] ss:$8 sps:$4 sm:$0xff]  }
  0x76   :  { %605 = vmatpush1.bf16.msra.mxu0 %v1531_v18  ;;  %1506 = vmatpush1.bf16.msra.mxu1 %v1531_v18 }
  0x79   :  { %607 = vmatmul.mubr.bf16.vlgmr.msra.gmra.mrb[0].mxu0 %v1532_v19  ;;  %735 = vmatmul.mubr.bf16.vlgmr.msra.gmra.mrb[0].mxu1 %v1535_v20 }
  0x7a   :  { %614 = vmatprep.mubr.bf16.mxu0 %v1538_v21  ;;  %742 = vmatprep.mubr.bf16.mxu1 %v1540_v22 }
  0x81   :  { %615 = vmatmul.mubr.bf16.gmra.mrb[4].mxu0 %v1542_v23  ;;  %743 = vmatmul.mubr.bf16.gmra.mrb[4].mxu1 %v1543_v24 }
  0x82   :  { %622 = vmatprep.mubr.bf16.mxu0 %v1544_v25  ;;  %750 = vmatprep.mubr.bf16.mxu1 %v1546_v26 }
  0x89   :  { %623 = vmatmul.mubr.bf16.gmra.mrb[8].mxu0 %v1548_v27  ;;  %751 = vmatmul.mubr.bf16.gmra.mrb[8].mxu1 %v1549_v28 }
  0x8a   :  { %630 = vmatprep.mubr.bf16.mxu0 %v1550_v29  ;;  %758 = vmatprep.mubr.bf16.mxu1 %v1552_v30 }
  0x91   :  { %631 = vmatmul.mubr.bf16.gmra.mrb[12].mxu0 %v1554_v31  ;;  %759 = vmatmul.mubr.bf16.gmra.mrb[12].mxu1 %v1555_v32 }
  0x92   :  { %638 = vmatprep.mubr.bf16.mxu0 %v1556_v33  ;;  %766 = vmatprep.mubr.bf16.mxu1 %v1558_v34 }
  0x99   :  { %639 = vmatmul.mubr.bf16.gmra.mrb[16].mxu0 %v1560_v35  ;;  %767 = vmatmul.mubr.bf16.gmra.mrb[16].mxu1 %v1561_v36 }
  0x9a   :  { %646 = vmatprep.mubr.bf16.mxu0 %v1562_v37  ;;  %774 = vmatprep.mubr.bf16.mxu1 %v1564_v38 }
  0xa1   :  { %647 = vmatmul.mubr.bf16.gmra.mrb[20].mxu0 %v1566_v39  ;;  %775 = vmatmul.mubr.bf16.gmra.mrb[20].mxu1 %v1567_v40 }
  0xa2   :  { %654 = vmatprep.mubr.bf16.mxu0 %v1568_v41  ;;  %782 = vmatprep.mubr.bf16.mxu1 %v1570_v42 }
  0xa9   :  { %655 = vmatmul.mubr.bf16.gmra.mrb[24].mxu0 %v1572_v43  ;;  %783 = vmatmul.mubr.bf16.gmra.mrb[24].mxu1 %v1573_v44 }
  0xaa   :  { %662 = vmatprep.mubr.bf16.mxu0 %v1574_v45  ;;  %790 = vmatprep.mubr.bf16.mxu1 %v1576_v46 }
  0xb1   :  { %663 = vmatmul.mubr.bf16.gmra.mrb[28].mxu0 %v1578_v47  ;;  %791 = vmatmul.mubr.bf16.gmra.mrb[28].mxu1 %v1579_v48 }
  0xb2   :  { %670 = vmatprep.mubr.bf16.mxu0 %v1580_v49  ;;  %798 = vmatprep.mubr.bf16.mxu1 %v1582_v50 }
  0xb9   :  { %671 = vmatmul.mubr.bf16.gmra.mrb[32].mxu0 %v1584_v51  ;;  %799 = vmatmul.mubr.bf16.gmra.mrb[32].mxu1 %v1585_v52 }
  0xba   :  { %678 = vmatprep.mubr.bf16.mxu0 %v1586_v53  ;;  %806 = vmatprep.mubr.bf16.mxu1 %v1588_v54 }
  0xc1   :  { %679 = vmatmul.mubr.bf16.gmra.mrb[36].mxu0 %v1590_v55  ;;  %807 = vmatmul.mubr.bf16.gmra.mrb[36].mxu1 %v1591_v56 }
  0xc2   :  { %686 = vmatprep.mubr.bf16.mxu0 %v1592_v57  ;;  %814 = vmatprep.mubr.bf16.mxu1 %v1594_v58 }
  0xc9   :  { %687 = vmatmul.mubr.bf16.gmra.mrb[40].mxu0 %v1596_v59  ;;  %815 = vmatmul.mubr.bf16.gmra.mrb[40].mxu1 %v1597_v60 }
  0xca   :  { %694 = vmatprep.mubr.bf16.mxu0 %v1598_v61  ;;  %822 = vmatprep.mubr.bf16.mxu1 %v1600_v62 }
  0xd1   :  { %695 = vmatmul.mubr.bf16.gmra.mrb[44].mxu0 %v1602_v63  ;;  %823 = vmatmul.mubr.bf16.gmra.mrb[44].mxu1 %v1603_v0 }
  0xd2   :  { %702 = vmatprep.mubr.bf16.mxu0 %v1604_v1  ;;  %830 = vmatprep.mubr.bf16.mxu1 %v1606_v2 }
  0xd9   :  { %703 = vmatmul.mubr.bf16.gmra.mrb[48].mxu0 %v1608_v3  ;;  %831 = vmatmul.mubr.bf16.gmra.mrb[48].mxu1 %v1609_v4 }
  0xda   :  { %710 = vmatprep.mubr.bf16.mxu0 %v1610_v5  ;;  %838 = vmatprep.mubr.bf16.mxu1 %v1612_v6 }
  0xe1   :  { %711 = vmatmul.mubr.bf16.gmra.mrb[52].mxu0 %v1614_v7  ;;  %839 = vmatmul.mubr.bf16.gmra.mrb[52].mxu1 %v1615_v8 }
  0xe2   :  { %718 = vmatprep.mubr.bf16.mxu0 %v1616_v9  ;;  %846 = vmatprep.mubr.bf16.mxu1 %v1618_v10 }
  0xe9   :  { %719 = vmatmul.mubr.bf16.gmra.mrb[56].mxu0 %v1620_v11  ;;  %847 = vmatmul.mubr.bf16.gmra.mrb[56].mxu1 %v1621_v12 }
  0xea   :  { %726 = vmatprep.mubr.bf16.mxu0 %v1622_v13  ;;  %854 = vmatprep.mubr.bf16.mxu1 %v1624_v14 }
  0xf1   :  { %727 = vmatmul.mubr.bf16.gmra.mrb[60].mxu0 %v1626_v15  ;;  %855 = vmatmul.mubr.bf16.gmra.mrb[60].mxu1 %v1627_v16 }
 0x14c   :  { %v608_v18 = vpop.f32.mrb[0].mxu0  ;;  %v736_v19 = vpop.f32.mrb[0].mxu1 }
 0x14d   :  { %v609_v20 = vadd.f32 %v1822_v17, %v608_v18  ;;  %v737_v21 = vadd.f32 %v1822_v17, %v736_v19  ;;  %v610_v22 = vpop.f32.mrb[1].mxu0  ;;  %v738_v23 = vpop.f32.mrb[1].mxu1 }
 0x14e   :  { %v611_v24 = vpop.f32.mrb[2].mxu0  ;;  %v739_v25 = vpop.f32.mrb[2].mxu1 }
 0x14f   :  { %v863_v26 = vmax.f32 %v609_v20, 0.0  ;;  %v895_v27 = vmax.f32 %v737_v21, 0.0  ;;  %v612_v28 = vadd.f32 %v1822_v17, %v611_v24  ;;  %v740_v29 = vadd.f32 %v1822_v17, %v739_v25  ;;  %v613_v30 = vpop.f32.mrb[3].mxu0  ;;  %v741_v31 = vpop.f32.mrb[3].mxu1 }
 0x151   :  { %v1411_v32 = vpack.c.bf16 %v863_v26, %v863_v26  ;;  %v1443_v33 = vpack.c.bf16 %v895_v27, %v895_v27  ;;  %v864_v34 = vmax.f32 %v612_v28, 0.0  ;;  %v896_v35 = vmax.f32 %v740_v29, 0.0 }
 0x153   :  { %1184 = vst.msk [vmem:[#allocation8] sm:$0xf] %vm1183_vm0, %v1411_v32  ;;  %1216 = vst.msk [vmem:[#allocation8 + $0x80] sm:$0xf] %vm1183_vm0, %v1443_v33  ;;  %v1412_v36 = vpack.c.bf16 %v864_v34, %v864_v34  ;;  %v1444_v37 = vpack.c.bf16 %v896_v35, %v896_v35 }
 0x154   :  { %v616_v38 = vpop.f32.mrb[4].mxu0  ;;  %v744_v39 = vpop.f32.mrb[4].mxu1 }
 0x155   :  { %1185 = vst.msk [vmem:[#allocation8 + $0x4] sm:$0xf] %vm1183_vm0, %v1412_v36  ;;  %1217 = vst.msk [vmem:[#allocation8 + $0x84] sm:$0xf] %vm1183_vm0, %v1444_v37  ;;  %v617_v40 = vadd.f32 %v1822_v17, %v616_v38  ;;  %v745_v41 = vadd.f32 %v1822_v17, %v744_v39  ;;  %v618_v42 = vpop.f32.mrb[5].mxu0  ;;  %v746_v43 = vpop.f32.mrb[5].mxu1 }
 0x156   :  { %v619_v44 = vpop.f32.mrb[6].mxu0  ;;  %v747_v45 = vpop.f32.mrb[6].mxu1 }
 0x157   :  { %v865_v46 = vmax.f32 %v617_v40, 0.0  ;;  %v897_v47 = vmax.f32 %v745_v41, 0.0  ;;  %v620_v48 = vadd.f32 %v1822_v17, %v619_v44  ;;  %v748_v49 = vadd.f32 %v1822_v17, %v747_v45  ;;  %v621_v50 = vpop.f32.mrb[7].mxu0  ;;  %v749_v51 = vpop.f32.mrb[7].mxu1 }
 0x159   :  { %v1413_v52 = vpack.c.bf16 %v865_v46, %v865_v46  ;;  %v1445_v53 = vpack.c.bf16 %v897_v47, %v897_v47  ;;  %v866_v54 = vmax.f32 %v620_v48, 0.0  ;;  %v898_v55 = vmax.f32 %v748_v49, 0.0 }
 0x15b   :  { %1186 = vst.msk [vmem:[#allocation8 + $0x8] sm:$0xf] %vm1183_vm0, %v1413_v52  ;;  %1218 = vst.msk [vmem:[#allocation8 + $0x88] sm:$0xf] %vm1183_vm0, %v1445_v53  ;;  %v1414_v56 = vpack.c.bf16 %v866_v54, %v866_v54  ;;  %v1446_v57 = vpack.c.bf16 %v898_v55, %v898_v55 }
 0x15c   :  { %v624_v58 = vpop.f32.mrb[8].mxu0  ;;  %v752_v59 = vpop.f32.mrb[8].mxu1 }
 0x15d   :  { %1187 = vst.msk [vmem:[#allocation8 + $0xc] sm:$0xf] %vm1183_vm0, %v1414_v56  ;;  %1219 = vst.msk [vmem:[#allocation8 + $0x8c] sm:$0xf] %vm1183_vm0, %v1446_v57  ;;  %v625_v60 = vadd.f32 %v1822_v17, %v624_v58  ;;  %v753_v61 = vadd.f32 %v1822_v17, %v752_v59  ;;  %v626_v62 = vpop.f32.mrb[9].mxu0  ;;  %v754_v63 = vpop.f32.mrb[9].mxu1 }
 0x15e   :  { %v627_v0 = vpop.f32.mrb[10].mxu0  ;;  %v755_v1 = vpop.f32.mrb[10].mxu1 }
 0x15f   :  { %v867_v2 = vmax.f32 %v625_v60, 0.0  ;;  %v899_v3 = vmax.f32 %v753_v61, 0.0  ;;  %v628_v4 = vadd.f32 %v1822_v17, %v627_v0  ;;  %v756_v5 = vadd.f32 %v1822_v17, %v755_v1  ;;  %v629_v6 = vpop.f32.mrb[11].mxu0  ;;  %v757_v7 = vpop.f32.mrb[11].mxu1 }
 0x161   :  { %v1415_v8 = vpack.c.bf16 %v867_v2, %v867_v2  ;;  %v1447_v9 = vpack.c.bf16 %v899_v3, %v899_v3  ;;  %v868_v10 = vmax.f32 %v628_v4, 0.0  ;;  %v900_v11 = vmax.f32 %v756_v5, 0.0 }
 0x163   :  { %1188 = vst.msk [vmem:[#allocation8 + $0x10] sm:$0xf] %vm1183_vm0, %v1415_v8  ;;  %1220 = vst.msk [vmem:[#allocation8 + $0x90] sm:$0xf] %vm1183_vm0, %v1447_v9  ;;  %v1416_v12 = vpack.c.bf16 %v868_v10, %v868_v10  ;;  %v1448_v13 = vpack.c.bf16 %v900_v11, %v900_v11 }
 0x164   :  { %v632_v14 = vpop.f32.mrb[12].mxu0  ;;  %v760_v15 = vpop.f32.mrb[12].mxu1 }
 0x165   :  { %1189 = vst.msk [vmem:[#allocation8 + $0x14] sm:$0xf] %vm1183_vm0, %v1416_v12  ;;  %1221 = vst.msk [vmem:[#allocation8 + $0x94] sm:$0xf] %vm1183_vm0, %v1448_v13  ;;  %v633_v16 = vadd.f32 %v1822_v17, %v632_v14  ;;  %v761_v18 = vadd.f32 %v1822_v17, %v760_v15  ;;  %v634_v19 = vpop.f32.mrb[13].mxu0  ;;  %v762_v20 = vpop.f32.mrb[13].mxu1 }
 0x166   :  { %v635_v21 = vpop.f32.mrb[14].mxu0  ;;  %v763_v22 = vpop.f32.mrb[14].mxu1 }
 0x167   :  { %v869_v23 = vmax.f32 %v633_v16, 0.0  ;;  %v901_v24 = vmax.f32 %v761_v18, 0.0  ;;  %v636_v25 = vadd.f32 %v1822_v17, %v635_v21  ;;  %v764_v26 = vadd.f32 %v1822_v17, %v763_v22  ;;  %v637_v27 = vpop.f32.mrb[15].mxu0  ;;  %v765_v28 = vpop.f32.mrb[15].mxu1 }
 0x169   :  { %v1417_v29 = vpack.c.bf16 %v869_v23, %v869_v23  ;;  %v1449_v30 = vpack.c.bf16 %v901_v24, %v901_v24  ;;  %v870_v31 = vmax.f32 %v636_v25, 0.0  ;;  %v902_v32 = vmax.f32 %v764_v26, 0.0 }
 0x16b   :  { %1190 = vst.msk [vmem:[#allocation8 + $0x18] sm:$0xf] %vm1183_vm0, %v1417_v29  ;;  %1222 = vst.msk [vmem:[#allocation8 + $0x98] sm:$0xf] %vm1183_vm0, %v1449_v30  ;;  %v1418_v33 = vpack.c.bf16 %v870_v31, %v870_v31  ;;  %v1450_v34 = vpack.c.bf16 %v902_v32, %v902_v32 }
 0x16c   :  { %v640_v35 = vpop.f32.mrb[16].mxu0  ;;  %v768_v36 = vpop.f32.mrb[16].mxu1 }
 0x16d   :  { %1191 = vst.msk [vmem:[#allocation8 + $0x1c] sm:$0xf] %vm1183_vm0, %v1418_v33  ;;  %1223 = vst.msk [vmem:[#allocation8 + $0x9c] sm:$0xf] %vm1183_vm0, %v1450_v34  ;;  %v641_v37 = vadd.f32 %v1822_v17, %v640_v35  ;;  %v769_v38 = vadd.f32 %v1822_v17, %v768_v36  ;;  %v642_v39 = vpop.f32.mrb[17].mxu0  ;;  %v770_v40 = vpop.f32.mrb[17].mxu1 }
 0x16e   :  { %v643_v41 = vpop.f32.mrb[18].mxu0  ;;  %v771_v42 = vpop.f32.mrb[18].mxu1 }
 0x16f   :  { %v871_v43 = vmax.f32 %v641_v37, 0.0  ;;  %v903_v44 = vmax.f32 %v769_v38, 0.0  ;;  %v644_v45 = vadd.f32 %v1822_v17, %v643_v41  ;;  %v772_v46 = vadd.f32 %v1822_v17, %v771_v42  ;;  %v645_v47 = vpop.f32.mrb[19].mxu0  ;;  %v773_v48 = vpop.f32.mrb[19].mxu1 }
 0x171   :  { %v1419_v49 = vpack.c.bf16 %v871_v43, %v871_v43  ;;  %v1451_v50 = vpack.c.bf16 %v903_v44, %v903_v44  ;;  %v872_v51 = vmax.f32 %v644_v45, 0.0  ;;  %v904_v52 = vmax.f32 %v772_v46, 0.0 }
 0x173   :  { %1192 = vst.msk [vmem:[#allocation8 + $0x20] sm:$0xf] %vm1183_vm0, %v1419_v49  ;;  %1224 = vst.msk [vmem:[#allocation8 + $0xa0] sm:$0xf] %vm1183_vm0, %v1451_v50  ;;  %v1420_v53 = vpack.c.bf16 %v872_v51, %v872_v51  ;;  %v1452_v54 = vpack.c.bf16 %v904_v52, %v904_v52 }
 0x174   :  { %v648_v55 = vpop.f32.mrb[20].mxu0  ;;  %v776_v56 = vpop.f32.mrb[20].mxu1 }
 0x175   :  { %1193 = vst.msk [vmem:[#allocation8 + $0x24] sm:$0xf] %vm1183_vm0, %v1420_v53  ;;  %1225 = vst.msk [vmem:[#allocation8 + $0xa4] sm:$0xf] %vm1183_vm0, %v1452_v54  ;;  %v649_v57 = vadd.f32 %v1822_v17, %v648_v55  ;;  %v777_v58 = vadd.f32 %v1822_v17, %v776_v56  ;;  %v650_v59 = vpop.f32.mrb[21].mxu0  ;;  %v778_v60 = vpop.f32.mrb[21].mxu1 }
 0x176   :  { %v651_v61 = vpop.f32.mrb[22].mxu0  ;;  %v779_v62 = vpop.f32.mrb[22].mxu1 }
 0x177   :  { %v873_v63 = vmax.f32 %v649_v57, 0.0  ;;  %v905_v0 = vmax.f32 %v777_v58, 0.0  ;;  %v652_v1 = vadd.f32 %v1822_v17, %v651_v61  ;;  %v780_v2 = vadd.f32 %v1822_v17, %v779_v62  ;;  %v653_v3 = vpop.f32.mrb[23].mxu0  ;;  %v781_v4 = vpop.f32.mrb[23].mxu1 }
 0x179   :  { %v1421_v5 = vpack.c.bf16 %v873_v63, %v873_v63  ;;  %v1453_v6 = vpack.c.bf16 %v905_v0, %v905_v0  ;;  %v874_v7 = vmax.f32 %v652_v1, 0.0  ;;  %v906_v8 = vmax.f32 %v780_v2, 0.0 }
 0x17b   :  { %1194 = vst.msk [vmem:[#allocation8 + $0x28] sm:$0xf] %vm1183_vm0, %v1421_v5  ;;  %1226 = vst.msk [vmem:[#allocation8 + $0xa8] sm:$0xf] %vm1183_vm0, %v1453_v6  ;;  %v1422_v9 = vpack.c.bf16 %v874_v7, %v874_v7  ;;  %v1454_v10 = vpack.c.bf16 %v906_v8, %v906_v8 }
 0x17c   :  { %v656_v11 = vpop.f32.mrb[24].mxu0  ;;  %v784_v12 = vpop.f32.mrb[24].mxu1 }
 0x17d   :  { %1195 = vst.msk [vmem:[#allocation8 + $0x2c] sm:$0xf] %vm1183_vm0, %v1422_v9  ;;  %1227 = vst.msk [vmem:[#allocation8 + $0xac] sm:$0xf] %vm1183_vm0, %v1454_v10  ;;  %v657_v13 = vadd.f32 %v1822_v17, %v656_v11  ;;  %v785_v14 = vadd.f32 %v1822_v17, %v784_v12  ;;  %v658_v15 = vpop.f32.mrb[25].mxu0  ;;  %v786_v16 = vpop.f32.mrb[25].mxu1 }
 0x17e   :  { %v659_v18 = vpop.f32.mrb[26].mxu0  ;;  %v787_v19 = vpop.f32.mrb[26].mxu1 }
 0x17f   :  { %v875_v20 = vmax.f32 %v657_v13, 0.0  ;;  %v907_v21 = vmax.f32 %v785_v14, 0.0  ;;  %v660_v22 = vadd.f32 %v1822_v17, %v659_v18  ;;  %v788_v23 = vadd.f32 %v1822_v17, %v787_v19  ;;  %v661_v24 = vpop.f32.mrb[27].mxu0  ;;  %v789_v25 = vpop.f32.mrb[27].mxu1 }
 0x181   :  { %v1423_v26 = vpack.c.bf16 %v875_v20, %v875_v20  ;;  %v1455_v27 = vpack.c.bf16 %v907_v21, %v907_v21  ;;  %v876_v28 = vmax.f32 %v660_v22, 0.0  ;;  %v908_v29 = vmax.f32 %v788_v23, 0.0 }
 0x183   :  { %1196 = vst.msk [vmem:[#allocation8 + $0x30] sm:$0xf] %vm1183_vm0, %v1423_v26  ;;  %1228 = vst.msk [vmem:[#allocation8 + $0xb0] sm:$0xf] %vm1183_vm0, %v1455_v27  ;;  %v1424_v30 = vpack.c.bf16 %v876_v28, %v876_v28  ;;  %v1456_v31 = vpack.c.bf16 %v908_v29, %v908_v29 }
 0x184   :  { %v664_v32 = vpop.f32.mrb[28].mxu0  ;;  %v792_v33 = vpop.f32.mrb[28].mxu1 }
 0x185   :  { %1197 = vst.msk [vmem:[#allocation8 + $0x34] sm:$0xf] %vm1183_vm0, %v1424_v30  ;;  %1229 = vst.msk [vmem:[#allocation8 + $0xb4] sm:$0xf] %vm1183_vm0, %v1456_v31  ;;  %v665_v34 = vadd.f32 %v1822_v17, %v664_v32  ;;  %v793_v35 = vadd.f32 %v1822_v17, %v792_v33  ;;  %v666_v36 = vpop.f32.mrb[29].mxu0  ;;  %v794_v37 = vpop.f32.mrb[29].mxu1 }
 0x186   :  { %v667_v38 = vpop.f32.mrb[30].mxu0  ;;  %v795_v39 = vpop.f32.mrb[30].mxu1 }
 0x187   :  { %v877_v40 = vmax.f32 %v665_v34, 0.0  ;;  %v909_v41 = vmax.f32 %v793_v35, 0.0  ;;  %v668_v42 = vadd.f32 %v1822_v17, %v667_v38  ;;  %v796_v43 = vadd.f32 %v1822_v17, %v795_v39  ;;  %v669_v44 = vpop.f32.mrb[31].mxu0  ;;  %v797_v45 = vpop.f32.mrb[31].mxu1 }
 0x189   :  { %v1425_v46 = vpack.c.bf16 %v877_v40, %v877_v40  ;;  %v1457_v47 = vpack.c.bf16 %v909_v41, %v909_v41  ;;  %v878_v48 = vmax.f32 %v668_v42, 0.0  ;;  %v910_v49 = vmax.f32 %v796_v43, 0.0 }
 0x18b   :  { %1198 = vst.msk [vmem:[#allocation8 + $0x38] sm:$0xf] %vm1183_vm0, %v1425_v46  ;;  %1230 = vst.msk [vmem:[#allocation8 + $0xb8] sm:$0xf] %vm1183_vm0, %v1457_v47  ;;  %v1426_v50 = vpack.c.bf16 %v878_v48, %v878_v48  ;;  %v1458_v51 = vpack.c.bf16 %v910_v49, %v910_v49 }
 0x18c   :  { %v672_v52 = vpop.f32.mrb[32].mxu0  ;;  %v800_v53 = vpop.f32.mrb[32].mxu1 }
 0x18d   :  { %1199 = vst.msk [vmem:[#allocation8 + $0x3c] sm:$0xf] %vm1183_vm0, %v1426_v50  ;;  %1231 = vst.msk [vmem:[#allocation8 + $0xbc] sm:$0xf] %vm1183_vm0, %v1458_v51  ;;  %v673_v54 = vadd.f32 %v1822_v17, %v672_v52  ;;  %v801_v55 = vadd.f32 %v1822_v17, %v800_v53  ;;  %v674_v56 = vpop.f32.mrb[33].mxu0  ;;  %v802_v57 = vpop.f32.mrb[33].mxu1 }
 0x18e   :  { %v675_v58 = vpop.f32.mrb[34].mxu0  ;;  %v803_v59 = vpop.f32.mrb[34].mxu1 }
 0x18f   :  { %v879_v60 = vmax.f32 %v673_v54, 0.0  ;;  %v911_v61 = vmax.f32 %v801_v55, 0.0  ;;  %v676_v62 = vadd.f32 %v1822_v17, %v675_v58  ;;  %v804_v63 = vadd.f32 %v1822_v17, %v803_v59  ;;  %v677_v0 = vpop.f32.mrb[35].mxu0  ;;  %v805_v1 = vpop.f32.mrb[35].mxu1 }
 0x191   :  { %v1427_v2 = vpack.c.bf16 %v879_v60, %v879_v60  ;;  %v1459_v3 = vpack.c.bf16 %v911_v61, %v911_v61  ;;  %v880_v4 = vmax.f32 %v676_v62, 0.0  ;;  %v912_v5 = vmax.f32 %v804_v63, 0.0 }
 0x193   :  { %1200 = vst.msk [vmem:[#allocation8 + $0x40] sm:$0xf] %vm1183_vm0, %v1427_v2  ;;  %1232 = vst.msk [vmem:[#allocation8 + $0xc0] sm:$0xf] %vm1183_vm0, %v1459_v3  ;;  %v1428_v6 = vpack.c.bf16 %v880_v4, %v880_v4  ;;  %v1460_v7 = vpack.c.bf16 %v912_v5, %v912_v5 }
 0x194   :  { %v680_v8 = vpop.f32.mrb[36].mxu0  ;;  %v808_v9 = vpop.f32.mrb[36].mxu1 }
 0x195   :  { %1201 = vst.msk [vmem:[#allocation8 + $0x44] sm:$0xf] %vm1183_vm0, %v1428_v6  ;;  %1233 = vst.msk [vmem:[#allocation8 + $0xc4] sm:$0xf] %vm1183_vm0, %v1460_v7  ;;  %v681_v10 = vadd.f32 %v1822_v17, %v680_v8  ;;  %v809_v11 = vadd.f32 %v1822_v17, %v808_v9  ;;  %v682_v12 = vpop.f32.mrb[37].mxu0  ;;  %v810_v13 = vpop.f32.mrb[37].mxu1 }
 0x196   :  { %v683_v14 = vpop.f32.mrb[38].mxu0  ;;  %v811_v15 = vpop.f32.mrb[38].mxu1 }
 0x197   :  { %v881_v16 = vmax.f32 %v681_v10, 0.0  ;;  %v913_v18 = vmax.f32 %v809_v11, 0.0  ;;  %v684_v19 = vadd.f32 %v1822_v17, %v683_v14  ;;  %v812_v20 = vadd.f32 %v1822_v17, %v811_v15  ;;  %v685_v21 = vpop.f32.mrb[39].mxu0  ;;  %v813_v22 = vpop.f32.mrb[39].mxu1 }
 0x199   :  { %v1429_v23 = vpack.c.bf16 %v881_v16, %v881_v16  ;;  %v1461_v24 = vpack.c.bf16 %v913_v18, %v913_v18  ;;  %v882_v25 = vmax.f32 %v684_v19, 0.0  ;;  %v914_v26 = vmax.f32 %v812_v20, 0.0 }
 0x19b   :  { %1202 = vst.msk [vmem:[#allocation8 + $0x48] sm:$0xf] %vm1183_vm0, %v1429_v23  ;;  %1234 = vst.msk [vmem:[#allocation8 + $0xc8] sm:$0xf] %vm1183_vm0, %v1461_v24  ;;  %v1430_v27 = vpack.c.bf16 %v882_v25, %v882_v25  ;;  %v1462_v28 = vpack.c.bf16 %v914_v26, %v914_v26 }
 0x19c   :  { %v688_v29 = vpop.f32.mrb[40].mxu0  ;;  %v816_v30 = vpop.f32.mrb[40].mxu1 }
 0x19d   :  { %1203 = vst.msk [vmem:[#allocation8 + $0x4c] sm:$0xf] %vm1183_vm0, %v1430_v27  ;;  %1235 = vst.msk [vmem:[#allocation8 + $0xcc] sm:$0xf] %vm1183_vm0, %v1462_v28  ;;  %v689_v31 = vadd.f32 %v1822_v17, %v688_v29  ;;  %v817_v32 = vadd.f32 %v1822_v17, %v816_v30  ;;  %v690_v33 = vpop.f32.mrb[41].mxu0  ;;  %v818_v34 = vpop.f32.mrb[41].mxu1 }
 0x19e   :  { %v691_v35 = vpop.f32.mrb[42].mxu0  ;;  %v819_v36 = vpop.f32.mrb[42].mxu1 }
 0x19f   :  { %v883_v37 = vmax.f32 %v689_v31, 0.0  ;;  %v915_v38 = vmax.f32 %v817_v32, 0.0  ;;  %v692_v39 = vadd.f32 %v1822_v17, %v691_v35  ;;  %v820_v40 = vadd.f32 %v1822_v17, %v819_v36  ;;  %v693_v41 = vpop.f32.mrb[43].mxu0  ;;  %v821_v42 = vpop.f32.mrb[43].mxu1 }
 0x1a1   :  { %v1431_v43 = vpack.c.bf16 %v883_v37, %v883_v37  ;;  %v1463_v44 = vpack.c.bf16 %v915_v38, %v915_v38  ;;  %v884_v45 = vmax.f32 %v692_v39, 0.0  ;;  %v916_v46 = vmax.f32 %v820_v40, 0.0 }
 0x1a3   :  { %1204 = vst.msk [vmem:[#allocation8 + $0x50] sm:$0xf] %vm1183_vm0, %v1431_v43  ;;  %1236 = vst.msk [vmem:[#allocation8 + $0xd0] sm:$0xf] %vm1183_vm0, %v1463_v44  ;;  %v1432_v47 = vpack.c.bf16 %v884_v45, %v884_v45  ;;  %v1464_v48 = vpack.c.bf16 %v916_v46, %v916_v46 }
 0x1a4   :  { %v696_v49 = vpop.f32.mrb[44].mxu0  ;;  %v824_v50 = vpop.f32.mrb[44].mxu1 }
 0x1a5   :  { %1205 = vst.msk [vmem:[#allocation8 + $0x54] sm:$0xf] %vm1183_vm0, %v1432_v47  ;;  %1237 = vst.msk [vmem:[#allocation8 + $0xd4] sm:$0xf] %vm1183_vm0, %v1464_v48  ;;  %v697_v51 = vadd.f32 %v1822_v17, %v696_v49  ;;  %v825_v52 = vadd.f32 %v1822_v17, %v824_v50  ;;  %v698_v53 = vpop.f32.mrb[45].mxu0  ;;  %v826_v54 = vpop.f32.mrb[45].mxu1 }
 0x1a6   :  { %v699_v55 = vpop.f32.mrb[46].mxu0  ;;  %v827_v56 = vpop.f32.mrb[46].mxu1 }
 0x1a7   :  { %v885_v57 = vmax.f32 %v697_v51, 0.0  ;;  %v917_v58 = vmax.f32 %v825_v52, 0.0  ;;  %v700_v59 = vadd.f32 %v1822_v17, %v699_v55  ;;  %v828_v60 = vadd.f32 %v1822_v17, %v827_v56  ;;  %v701_v61 = vpop.f32.mrb[47].mxu0  ;;  %v829_v62 = vpop.f32.mrb[47].mxu1 }
 0x1a9   :  { %v1433_v63 = vpack.c.bf16 %v885_v57, %v885_v57  ;;  %v1465_v0 = vpack.c.bf16 %v917_v58, %v917_v58  ;;  %v886_v1 = vmax.f32 %v700_v59, 0.0  ;;  %v918_v2 = vmax.f32 %v828_v60, 0.0 }
 0x1ab   :  { %1206 = vst.msk [vmem:[#allocation8 + $0x58] sm:$0xf] %vm1183_vm0, %v1433_v63  ;;  %1238 = vst.msk [vmem:[#allocation8 + $0xd8] sm:$0xf] %vm1183_vm0, %v1465_v0  ;;  %v1434_v3 = vpack.c.bf16 %v886_v1, %v886_v1  ;;  %v1466_v4 = vpack.c.bf16 %v918_v2, %v918_v2 }
 0x1ac   :  { %v704_v5 = vpop.f32.mrb[48].mxu0  ;;  %v832_v6 = vpop.f32.mrb[48].mxu1 }
 0x1ad   :  { %1207 = vst.msk [vmem:[#allocation8 + $0x5c] sm:$0xf] %vm1183_vm0, %v1434_v3  ;;  %1239 = vst.msk [vmem:[#allocation8 + $0xdc] sm:$0xf] %vm1183_vm0, %v1466_v4  ;;  %v705_v7 = vadd.f32 %v1822_v17, %v704_v5  ;;  %v833_v8 = vadd.f32 %v1822_v17, %v832_v6  ;;  %v706_v9 = vpop.f32.mrb[49].mxu0  ;;  %v834_v10 = vpop.f32.mrb[49].mxu1 }
 0x1ae   :  { %v707_v11 = vpop.f32.mrb[50].mxu0  ;;  %v835_v12 = vpop.f32.mrb[50].mxu1 }
 0x1af   :  { %v887_v13 = vmax.f32 %v705_v7, 0.0  ;;  %v919_v14 = vmax.f32 %v833_v8, 0.0  ;;  %v708_v15 = vadd.f32 %v1822_v17, %v707_v11  ;;  %v836_v16 = vadd.f32 %v1822_v17, %v835_v12  ;;  %v709_v18 = vpop.f32.mrb[51].mxu0  ;;  %v837_v19 = vpop.f32.mrb[51].mxu1 }
 0x1b1   :  { %v1435_v20 = vpack.c.bf16 %v887_v13, %v887_v13  ;;  %v1467_v21 = vpack.c.bf16 %v919_v14, %v919_v14  ;;  %v888_v22 = vmax.f32 %v708_v15, 0.0  ;;  %v920_v23 = vmax.f32 %v836_v16, 0.0 }
 0x1b3   :  { %1208 = vst.msk [vmem:[#allocation8 + $0x60] sm:$0xf] %vm1183_vm0, %v1435_v20  ;;  %1240 = vst.msk [vmem:[#allocation8 + $0xe0] sm:$0xf] %vm1183_vm0, %v1467_v21  ;;  %v1436_v24 = vpack.c.bf16 %v888_v22, %v888_v22  ;;  %v1468_v25 = vpack.c.bf16 %v920_v23, %v920_v23 }
 0x1b4   :  { %v712_v26 = vpop.f32.mrb[52].mxu0  ;;  %v840_v27 = vpop.f32.mrb[52].mxu1 }
 0x1b5   :  { %1209 = vst.msk [vmem:[#allocation8 + $0x64] sm:$0xf] %vm1183_vm0, %v1436_v24  ;;  %1241 = vst.msk [vmem:[#allocation8 + $0xe4] sm:$0xf] %vm1183_vm0, %v1468_v25  ;;  %v713_v28 = vadd.f32 %v1822_v17, %v712_v26  ;;  %v841_v29 = vadd.f32 %v1822_v17, %v840_v27  ;;  %v714_v30 = vpop.f32.mrb[53].mxu0  ;;  %v842_v31 = vpop.f32.mrb[53].mxu1 }
 0x1b6   :  { %v715_v32 = vpop.f32.mrb[54].mxu0  ;;  %v843_v33 = vpop.f32.mrb[54].mxu1 }
 0x1b7   :  { %v889_v34 = vmax.f32 %v713_v28, 0.0  ;;  %v921_v35 = vmax.f32 %v841_v29, 0.0  ;;  %v716_v36 = vadd.f32 %v1822_v17, %v715_v32  ;;  %v844_v37 = vadd.f32 %v1822_v17, %v843_v33  ;;  %v717_v38 = vpop.f32.mrb[55].mxu0  ;;  %v845_v39 = vpop.f32.mrb[55].mxu1 }
 0x1b9   :  { %v1437_v40 = vpack.c.bf16 %v889_v34, %v889_v34  ;;  %v1469_v41 = vpack.c.bf16 %v921_v35, %v921_v35  ;;  %v890_v42 = vmax.f32 %v716_v36, 0.0  ;;  %v922_v43 = vmax.f32 %v844_v37, 0.0 }
 0x1bb   :  { %1210 = vst.msk [vmem:[#allocation8 + $0x68] sm:$0xf] %vm1183_vm0, %v1437_v40  ;;  %1242 = vst.msk [vmem:[#allocation8 + $0xe8] sm:$0xf] %vm1183_vm0, %v1469_v41  ;;  %v1438_v44 = vpack.c.bf16 %v890_v42, %v890_v42  ;;  %v1470_v45 = vpack.c.bf16 %v922_v43, %v922_v43 }
 0x1bc   :  { %v720_v46 = vpop.f32.mrb[56].mxu0  ;;  %v848_v47 = vpop.f32.mrb[56].mxu1 }
 0x1bd   :  { %1211 = vst.msk [vmem:[#allocation8 + $0x6c] sm:$0xf] %vm1183_vm0, %v1438_v44  ;;  %1243 = vst.msk [vmem:[#allocation8 + $0xec] sm:$0xf] %vm1183_vm0, %v1470_v45  ;;  %v721_v48 = vadd.f32 %v1822_v17, %v720_v46  ;;  %v849_v49 = vadd.f32 %v1822_v17, %v848_v47  ;;  %v722_v50 = vpop.f32.mrb[57].mxu0  ;;  %v850_v51 = vpop.f32.mrb[57].mxu1 }
 0x1be   :  { %v723_v52 = vpop.f32.mrb[58].mxu0  ;;  %v851_v53 = vpop.f32.mrb[58].mxu1 }
 0x1bf   :  { %v891_v54 = vmax.f32 %v721_v48, 0.0  ;;  %v923_v55 = vmax.f32 %v849_v49, 0.0  ;;  %v724_v56 = vadd.f32 %v1822_v17, %v723_v52  ;;  %v852_v57 = vadd.f32 %v1822_v17, %v851_v53  ;;  %v725_v58 = vpop.f32.mrb[59].mxu0  ;;  %v853_v59 = vpop.f32.mrb[59].mxu1 }
 0x1c1   :  { %v1439_v60 = vpack.c.bf16 %v891_v54, %v891_v54  ;;  %v1471_v61 = vpack.c.bf16 %v923_v55, %v923_v55  ;;  %v892_v62 = vmax.f32 %v724_v56, 0.0  ;;  %v924_v63 = vmax.f32 %v852_v57, 0.0 }
 0x1c3   :  { %1212 = vst.msk [vmem:[#allocation8 + $0x70] sm:$0xf] %vm1183_vm0, %v1439_v60  ;;  %1244 = vst.msk [vmem:[#allocation8 + $0xf0] sm:$0xf] %vm1183_vm0, %v1471_v61  ;;  %v1440_v0 = vpack.c.bf16 %v892_v62, %v892_v62  ;;  %v1472_v1 = vpack.c.bf16 %v924_v63, %v924_v63 }
 0x1c4   :  { %v728_v2 = vpop.f32.mrb[60].mxu0  ;;  %v856_v3 = vpop.f32.mrb[60].mxu1 }
 0x1c5   :  { %1213 = vst.msk [vmem:[#allocation8 + $0x74] sm:$0xf] %vm1183_vm0, %v1440_v0  ;;  %1245 = vst.msk [vmem:[#allocation8 + $0xf4] sm:$0xf] %vm1183_vm0, %v1472_v1  ;;  %v729_v4 = vadd.f32 %v1822_v17, %v728_v2  ;;  %v857_v5 = vadd.f32 %v1822_v17, %v856_v3  ;;  %v730_v6 = vpop.f32.mrb[61].mxu0  ;;  %v858_v7 = vpop.f32.mrb[61].mxu1 }
 0x1c6   :  { %v731_v8 = vpop.f32.mrb[62].mxu0  ;;  %v859_v9 = vpop.f32.mrb[62].mxu1 }
 0x1c7   :  { %v893_v10 = vmax.f32 %v729_v4, 0.0  ;;  %v925_v11 = vmax.f32 %v857_v5, 0.0  ;;  %v732_v12 = vadd.f32 %v1822_v17, %v731_v8  ;;  %v860_v13 = vadd.f32 %v1822_v17, %v859_v9  ;;  %v733_v14 = vpop.f32.mrb[63].mxu0  ;;  %v861_v15 = vpop.f32.mrb[63].mxu1 }
 0x1c9   :  { %v1441_v16 = vpack.c.bf16 %v893_v10, %v893_v10  ;;  %v1473_v18 = vpack.c.bf16 %v925_v11, %v925_v11  ;;  %v894_v19 = vmax.f32 %v732_v12, 0.0  ;;  %v926_v20 = vmax.f32 %v860_v13, 0.0 }
 0x1cb   :  { %1214 = vst.msk [vmem:[#allocation8 + $0x78] sm:$0xf] %vm1183_vm0, %v1441_v16  ;;  %1246 = vst.msk [vmem:[#allocation8 + $0xf8] sm:$0xf] %vm1183_vm0, %v1473_v18  ;;  %v1442_v21 = vpack.c.bf16 %v894_v19, %v894_v19  ;;  %v1474_v22 = vpack.c.bf16 %v926_v20, %v926_v20 }
 0x1cd   :  { %1215 = vst.msk [vmem:[#allocation8 + $0x7c] sm:$0xf] %vm1183_vm0, %v1442_v21  ;;  %1247 = vst.msk [vmem:[#allocation8 + $0xfc] sm:$0xf] %vm1183_vm0, %v1474_v22 }
 0x1ce   :  { %1705 = shalt.err (!%p1702_p0)
}
 0x1cf   :  { %s1706_s30 = scalar_lea.hbm %s1970_s3, 4096 }
 0x1d0   :  { %p1707_p1 = scmp.ne.s32.totalorder %s1970_s3, %s1706_s30  ;;  %p1710_p2 = scmp.lt.u32.totalorder %s1706_s30, %s1970_s3 }
 0x1d2   :  { %p1712_p3 = pnand %p1710_p2, %p1707_p1 }
 0x1d4   :  { %1715 = shalt.err (!%p1712_p3)
}
 0x1d5   :  { %1259 = dma.vmem_to_hbm [thread:$0]  %s1254_s26, 4096, %s1970_s3, [#allocation4], %s1723_s22, %s1723_s22, %s1724_s23  }
 0x1d6   :  { %1720 = dma.done.wait [#allocation4], 4096  }
 0x1d7   :  { %1721 = vsyncadd [#allocation4], 4294963200 }
 0x1d8   :  { %1263 = vsyncpa [#allocation3], 1 }
 0x1d9   :  { %1264 = vsyncpa [#allocation6], 1 }
 0x1da   :  { %1265 = vsyncpa [#allocation4], 1 }

</bundles_post_ra>
